<compile_context>
chip_gen: v7x
topology: tpu7x:2x2x1
jax: 0.10.0
libtpu: 0.0.40
codegen_flags: <defaults>
</compile_context>

<pallas_src>
import jax
import jax.numpy as jnp
from jax.experimental import pallas as pl
from jax.experimental.pallas import tpu as pltpu


def _round_up(x, m):
    return ((x + m - 1) // m) * m


def _sublane_align(dtype):
    # Native (sublane, lane) tiling: 8 rows for 4-byte dtypes, 16 for 2-byte, 32 for 1-byte.
    return max(8, 32 // jnp.dtype(dtype).itemsize)


def _vmem_capacity_bytes():
    try:
        return int(pltpu.get_tpu_info().vmem_capacity_bytes)
    except Exception:
        return 64 * 1024 * 1024  # conservative (v7x-sized) fallback


def _intermediate_kernel(x_ref, w_ref, b_ref, o_ref, acc_ref):
    # x_ref: (tm, tk), w_ref: (tk, tn), b_ref: (1, tn), o_ref: (tm, tn), acc_ref: (tm, tn) f32
    k = pl.program_id(2)

    @pl.when(k == 0)
    def _():
        acc_ref[...] = jnp.zeros_like(acc_ref)

    acc_ref[...] += jnp.dot(x_ref[...], w_ref[...],
                            preferred_element_type=jnp.float32)

    @pl.when(k == pl.num_programs(2) - 1)
    def _():
        y = acc_ref[...] + b_ref[...].astype(jnp.float32)  # broadcast (1, tn) over rows
        o_ref[...] = jnp.maximum(y, 0.0).astype(o_ref.dtype)


def _build_call(M_pad, H_pad, I_pad, tm, tk, tn, out_dtype, itemsize,
                vmem_limit, single_buffer_invariants):
    ni, nj, nk = M_pad // tm, I_pad // tn, H_pad // tk

    w_kwargs = {}
    b_kwargs = {}
    if single_buffer_invariants:
        # Bias tile is tiny and only changes on the outermost (N) axis.
        b_kwargs["pipeline_mode"] = pl.Buffered(1)
        # Weight: single-buffer only when it is fully grid-invariant (one N tile,
        # no K split); otherwise keep double-buffering so the next weight tile's
        # DMA overlaps compute.
        if nj == 1 and nk == 1:
            w_kwargs["pipeline_mode"] = pl.Buffered(1)

    flops = 2 * M_pad * H_pad * I_pad
    bytes_accessed = itemsize * (M_pad * H_pad + H_pad * I_pad + I_pad + M_pad * I_pad)

    return pl.pallas_call(
        _intermediate_kernel,
        out_shape=jax.ShapeDtypeStruct((M_pad, I_pad), out_dtype),
        grid_spec=pltpu.PrefetchScalarGridSpec(
            num_scalar_prefetch=0,
            grid=(nj, ni, nk),  # N outer, M middle, K (reduction) last
            in_specs=[
                pl.BlockSpec((tm, tk), lambda j, i, k: (i, k)),              # x row tile
                pl.BlockSpec((tk, tn), lambda j, i, k: (k, j), **w_kwargs),  # weight tile
                pl.BlockSpec((1, tn), lambda j, i, k: (0, j), **b_kwargs),   # bias tile
            ],
            out_specs=pl.BlockSpec((tm, tn), lambda j, i, k: (i, j)),
            scratch_shapes=[pltpu.VMEM((tm, tn), jnp.float32)],
        ),
        compiler_params=pltpu.CompilerParams(
            dimension_semantics=("parallel", "parallel", "arbitrary"),
            vmem_limit_bytes=vmem_limit,
        ),
        cost_estimate=pl.CostEstimate(flops=flops, transcendentals=0,
                                      bytes_accessed=bytes_accessed),
    )


def make_intermediate_params(weight, bias):
    """One-time init. weight: PyTorch nn.Linear layout [I, H]. Returns (w_hi [H, I], bias [I])."""
    return jnp.asarray(weight).T, jnp.asarray(bias)


def intermediate_forward(hidden_states, w_hi, bias, *, tm=None, tn=None, tk=None):
    """relu(hidden_states @ w_hi + bias). hidden_states: [..., H]; w_hi: [H, I]; bias: [I]."""
    orig_shape = hidden_states.shape
    H = orig_shape[-1]
    assert w_hi.shape[0] == H, "w_hi must be pre-transposed to [hidden, intermediate]"
    I = w_hi.shape[1]

    x2d = hidden_states.reshape(-1, H)
    M = x2d.shape[0]
    out_dtype = hidden_states.dtype
    itemsize = jnp.dtype(out_dtype).itemsize
    row_align = _sublane_align(out_dtype)

    vmem_cap = _vmem_capacity_bytes()
    vmem_limit = int(vmem_cap * 3 // 4)  # leave headroom below physical VMEM

    # Per-generation defaults: bigger tiles on 128 MiB VMEM parts (v5e/v6e),
    # smaller on 64 MiB parts (v7x / unknown).
    if vmem_cap >= 128 * 1024 * 1024:
        tm_d, tn_d = 512, 1024
    else:
        tm_d, tn_d = 256, 512
    tk_cap = 4096  # keep the full-H contraction in one tile up to this; beyond, split K

    if tm is None:
        tm = tm_d
    if tn is None:
        tn = tn_d
    if tk is None:
        tk = H if H <= tk_cap else 2048

    # Clamp / align tile sizes, then zero-pad so every dimension divides evenly.
    tm = _round_up(min(tm, _round_up(M, row_align)), row_align)
    tn = _round_up(min(tn, _round_up(I, 128)), 128)
    tk = _round_up(tk, 128) if tk < H else H

    M_pad = _round_up(M, tm)
    I_pad = _round_up(I, tn)
    H_pad = _round_up(H, tk)

    if (M_pad, H_pad) != (M, H):
        x2d = jnp.pad(x2d, ((0, M_pad - M), (0, H_pad - H)))
    w = w_hi
    if (H_pad, I_pad) != (H, I):
        w = jnp.pad(w, ((0, H_pad - H), (0, I_pad - I)))
    b = bias
    if I_pad != I:
        b = jnp.pad(b, (0, I_pad - I))
    b2d = b.reshape(1, I_pad)

    try:
        call = _build_call(M_pad, H_pad, I_pad, tm, tk, tn, out_dtype, itemsize,
                           vmem_limit, single_buffer_invariants=True)
        out = call(x2d, w, b2d)
    except Exception:
        # If pl.Buffered(1) is not supported in this JAX build, fall back to the
        # default double-buffering (identical semantics, slightly more VMEM).
        call = _build_call(M_pad, H_pad, I_pad, tm, tk, tn, out_dtype, itemsize,
                           vmem_limit, single_buffer_invariants=False)
        out = call(x2d, w, b2d)

    if (M_pad, I_pad) != (M, I):
        out = out[:M, :I]
    return out.reshape(*orig_shape[:-1], I)


if __name__ == "__main__":
    # Small shapes consistent with the module: [batch, seq, hidden] -> [batch, seq, intermediate]
    batch, seq, hidden_size, intermediate_size = 2, 8, 32, 64

    key = jax.random.PRNGKey(0)
    kx, kw, kb = jax.random.split(key, 3)

    x = jax.random.normal(kx, (batch, seq, hidden_size), dtype=jnp.float32)
    bound = 1.0 / (hidden_size ** 0.5)
    weight = jax.random.uniform(kw, (intermediate_size, hidden_size),
                                minval=-bound, maxval=bound, dtype=jnp.float32)
    bias = jax.random.uniform(kb, (intermediate_size,),
                              minval=-bound, maxval=bound, dtype=jnp.float32)

    # One-time parameter prep (transpose weight to [H, I] outside the per-call path).
    w_hi, b = make_intermediate_params(weight, bias)

    # f32 path
    out = jax.block_until_ready(intermediate_forward(x, w_hi, b))
    ref = jnp.maximum(jnp.einsum("bsh,hi->bsi", x, w_hi) + b, 0.0)
    assert out.shape == (batch, seq, intermediate_size)
    assert jnp.allclose(out, ref, atol=1e-5, rtol=1e-5)

    # bf16 path (recommended on v6e / v7x: ~2x MXU throughput, f32 accumulation kept)
    xb = x.astype(jnp.bfloat16)
    wb = w_hi.astype(jnp.bfloat16)
    bb = b.astype(jnp.bfloat16)
    out_bf16 = jax.block_until_ready(intermediate_forward(xb, wb, bb))
    ref_bf16 = jnp.maximum(
        jnp.einsum("bsh,hi->bsi", xb.astype(jnp.float32), wb.astype(jnp.float32))
        + bb.astype(jnp.float32), 0.0)
    assert out_bf16.dtype == jnp.bfloat16
    assert jnp.allclose(out_bf16.astype(jnp.float32), ref_bf16, atol=5e-2, rtol=5e-2)

    print("KERNEL_OK")
</pallas_src>

<mosaic_0001>
module attributes {stable_mosaic.version = 11 : i64} {
  func.func @_intermediate_kernel(%arg0: i32, %arg1: i32, %arg2: i32, %arg3: memref<16x32xf32, #tpu.memory_space<vmem>>, %arg4: memref<32x128xf32, #tpu.memory_space<vmem>>, %arg5: memref<1x128xf32, #tpu.memory_space<vmem>>, %arg6: memref<16x128xf32, #tpu.memory_space<vmem>>, %arg7: memref<16x128xf32, #tpu.memory_space<vmem>>) attributes {dimension_semantics = [#tpu.dimension_semantics<parallel>, #tpu.dimension_semantics<parallel>, #tpu.dimension_semantics<arbitrary>], iteration_bounds = array<i64: 1, 1, 1>, scalar_prefetch = 0 : i64, scratch_operands = 1 : i64, tpu.core_type = #tpu.core_type<tc>, window_params = [{transform_indices = @transform_0, window_bounds = array<i64: 16, 32>}, {pipeline_mode = #tpu.pipeline_mode<synchronous>, transform_indices = @transform_1, window_bounds = array<i64: 32, 128>}, {pipeline_mode = #tpu.pipeline_mode<synchronous>, transform_indices = @transform_2, window_bounds = array<i64: 1, 128>}, {transform_indices = @transform_3, window_bounds = array<i64: 16, 128>}]} {
    %c0_i32 = arith.constant 0 : i32
    %0 = arith.cmpi eq, %arg2, %c0_i32 : i32
    %1 = arith.extui %0 : i1 to i32
    %c0_i32_0 = arith.constant 0 : i32
    %2 = arith.cmpi ne, %1, %c0_i32_0 : i32
    scf.if %2 {
      %cst_10 = arith.constant 0.000000e+00 : f32
      %12 = vector.broadcast %cst_10 : f32 to vector<16x128xf32>
      %c0_11 = arith.constant 0 : index
      %c0_12 = arith.constant 0 : index
      %13 = vector.load %arg7[%c0_11, %c0_12] : memref<16x128xf32, #tpu.memory_space<vmem>>, vector<16x128xf32>
      tpu.vector_store %arg7[%c0_11, %c0_12], %12 {strides = array<i32>} : memref<16x128xf32, #tpu.memory_space<vmem>>, vector<16x128xf32>,
    } else {
    }
    %c0 = arith.constant 0 : index
    %c0_1 = arith.constant 0 : index
    %3 = vector.load %arg7[%c0, %c0_1] : memref<16x128xf32, #tpu.memory_space<vmem>>, vector<16x128xf32>
    %c0_2 = arith.constant 0 : index
    %c0_3 = arith.constant 0 : index
    %4 = vector.load %arg3[%c0_2, %c0_3] : memref<16x32xf32, #tpu.memory_space<vmem>>, vector<16x32xf32>
    %c0_4 = arith.constant 0 : index
    %c0_5 = arith.constant 0 : index
    %5 = vector.load %arg4[%c0_4, %c0_5] : memref<32x128xf32, #tpu.memory_space<vmem>>, vector<32x128xf32>
    %cst = arith.constant dense<0.000000e+00> : vector<16x128xf32>
    %6 = tpu.matmul %4, %5, %cst {dimension_numbers = #tpu.dot_dimension_numbers<[1], [0], [0], [1], [0, 0, 1, 1], [], []>} : vector<16x32xf32>, vector<32x128xf32>, vector<16x128xf32> -> vector<16x128xf32>
    %7 = arith.addf %3, %6 : vector<16x128xf32>
    %c0_6 = arith.constant 0 : index
    %c0_7 = arith.constant 0 : index
    %8 = vector.load %arg7[%c0_6, %c0_7] : memref<16x128xf32, #tpu.memory_space<vmem>>, vector<16x128xf32>
    tpu.vector_store %arg7[%c0_6, %c0_7], %7 {strides = array<i32>} : memref<16x128xf32, #tpu.memory_space<vmem>>, vector<16x128xf32>,
    %c0_i32_8 = arith.constant 0 : i32
    %9 = arith.cmpi eq, %arg2, %c0_i32_8 : i32
    %10 = arith.extui %9 : i1 to i32
    %c0_i32_9 = arith.constant 0 : i32
    %11 = arith.cmpi ne, %10, %c0_i32_9 : i32
    scf.if %11 {
      %c0_10 = arith.constant 0 : index
      %c0_11 = arith.constant 0 : index
      %12 = vector.load %arg7[%c0_10, %c0_11] : memref<16x128xf32, #tpu.memory_space<vmem>>, vector<16x128xf32>
      %c0_12 = arith.constant 0 : index
      %c0_13 = arith.constant 0 : index
      %13 = vector.load %arg5[%c0_12, %c0_13] : memref<1x128xf32, #tpu.memory_space<vmem>>, vector<1x128xf32>
      %14 = vector.broadcast %13 : vector<1x128xf32> to vector<16x128xf32>
      %15 = arith.addf %12, %14 : vector<16x128xf32>
      %cst_14 = arith.constant 0.000000e+00 : f32
      %16 = vector.broadcast %cst_14 : f32 to vector<16x128xf32>
      %17 = arith.maximumf %15, %16 : vector<16x128xf32>
      %c0_15 = arith.constant 0 : index
      %c0_16 = arith.constant 0 : index
      %18 = vector.load %arg6[%c0_15, %c0_16] : memref<16x128xf32, #tpu.memory_space<vmem>>, vector<16x128xf32>
      tpu.vector_store %arg6[%c0_15, %c0_16], %17 {strides = array<i32>} : memref<16x128xf32, #tpu.memory_space<vmem>>, vector<16x128xf32>,
    } else {
    }
    return
  }
  func.func @transform_0(%arg0: i32, %arg1: i32, %arg2: i32) -> (i32, i32) {
    %c0_i32 = arith.constant 0 : i32
    return %arg1, %arg2 : i32, i32
  }
  func.func @transform_1(%arg0: i32, %arg1: i32, %arg2: i32) -> (i32, i32) {
    %c0_i32 = arith.constant 0 : i32
    return %arg2, %arg0 : i32, i32
  }
  func.func @transform_2(%arg0: i32, %arg1: i32, %arg2: i32) -> (i32, i32) {
    %c0_i32 = arith.constant 0 : i32
    %c0_i32_0 = arith.constant 0 : i32
    return %c0_i32, %arg0 : i32, i32
  }
  func.func @transform_3(%arg0: i32, %arg1: i32, %arg2: i32) -> (i32, i32) {
    %c0_i32 = arith.constant 0 : i32
    return %arg1, %arg0 : i32, i32
  }
}

module attributes {stable_mosaic.version = 11 : i64} {
  func.func @_intermediate_kernel(%arg0: i32, %arg1: i32, %arg2: i32, %arg3: memref<16x32xf32, #tpu.memory_space<vmem>>, %arg4: memref<32x128xf32, #tpu.memory_space<vmem>>, %arg5: memref<1x128xf32, #tpu.memory_space<vmem>>, %arg6: memref<16x128xf32, #tpu.memory_space<vmem>>, %arg7: memref<16x128xf32, #tpu.memory_space<vmem>>) attributes {dimension_semantics = [#tpu.dimension_semantics<parallel>, #tpu.dimension_semantics<parallel>, #tpu.dimension_semantics<arbitrary>], iteration_bounds = array<i64: 1, 1, 1>, scalar_prefetch = 0 : i64, scratch_operands = 1 : i64, tpu.core_type = #tpu.core_type<tc>, window_params = [{transform_indices = @transform_0, window_bounds = array<i64: 16, 32>}, {transform_indices = @transform_1, window_bounds = array<i64: 32, 128>}, {transform_indices = @transform_2, window_bounds = array<i64: 1, 128>}, {transform_indices = @transform_3, window_bounds = array<i64: 16, 128>}]} {
    %c0_i32 = arith.constant 0 : i32
    %0 = arith.cmpi eq, %arg2, %c0_i32 : i32
    %1 = arith.extui %0 : i1 to i32
    %c0_i32_0 = arith.constant 0 : i32
    %2 = arith.cmpi ne, %1, %c0_i32_0 : i32
    scf.if %2 {
      %cst_10 = arith.constant 0.000000e+00 : f32
      %12 = vector.broadcast %cst_10 : f32 to vector<16x128xf32>
      %c0_11 = arith.constant 0 : index
      %c0_12 = arith.constant 0 : index
      %13 = vector.load %arg7[%c0_11, %c0_12] : memref<16x128xf32, #tpu.memory_space<vmem>>, vector<16x128xf32>
      tpu.vector_store %arg7[%c0_11, %c0_12], %12 {strides = array<i32>} : memref<16x128xf32, #tpu.memory_space<vmem>>, vector<16x128xf32>,
    } else {
    }
    %c0 = arith.constant 0 : index
    %c0_1 = arith.constant 0 : index
    %3 = vector.load %arg7[%c0, %c0_1] : memref<16x128xf32, #tpu.memory_space<vmem>>, vector<16x128xf32>
    %c0_2 = arith.constant 0 : index
    %c0_3 = arith.constant 0 : index
    %4 = vector.load %arg3[%c0_2, %c0_3] : memref<16x32xf32, #tpu.memory_space<vmem>>, vector<16x32xf32>
    %c0_4 = arith.constant 0 : index
    %c0_5 = arith.constant 0 : index
    %5 = vector.load %arg4[%c0_4, %c0_5] : memref<32x128xf32, #tpu.memory_space<vmem>>, vector<32x128xf32>
    %cst = arith.constant dense<0.000000e+00> : vector<16x128xf32>
    %6 = tpu.matmul %4, %5, %cst {dimension_numbers = #tpu.dot_dimension_numbers<[1], [0], [0], [1], [0, 0, 1, 1], [], []>} : vector<16x32xf32>, vector<32x128xf32>, vector<16x128xf32> -> vector<16x128xf32>
    %7 = arith.addf %3, %6 : vector<16x128xf32>
    %c0_6 = arith.constant 0 : index
    %c0_7 = arith.constant 0 : index
    %8 = vector.load %arg7[%c0_6, %c0_7] : memref<16x128xf32, #tpu.memory_space<vmem>>, vector<16x128xf32>
    tpu.vector_store %arg7[%c0_6, %c0_7], %7 {strides = array<i32>} : memref<16x128xf32, #tpu.memory_space<vmem>>, vector<16x128xf32>,
    %c0_i32_8 = arith.constant 0 : i32
    %9 = arith.cmpi eq, %arg2, %c0_i32_8 : i32
    %10 = arith.extui %9 : i1 to i32
    %c0_i32_9 = arith.constant 0 : i32
    %11 = arith.cmpi ne, %10, %c0_i32_9 : i32
    scf.if %11 {
      %c0_10 = arith.constant 0 : index
      %c0_11 = arith.constant 0 : index
      %12 = vector.load %arg7[%c0_10, %c0_11] : memref<16x128xf32, #tpu.memory_space<vmem>>, vector<16x128xf32>
      %c0_12 = arith.constant 0 : index
      %c0_13 = arith.constant 0 : index
      %13 = vector.load %arg5[%c0_12, %c0_13] : memref<1x128xf32, #tpu.memory_space<vmem>>, vector<1x128xf32>
      %14 = vector.broadcast %13 : vector<1x128xf32> to vector<16x128xf32>
      %15 = arith.addf %12, %14 : vector<16x128xf32>
      %cst_14 = arith.constant 0.000000e+00 : f32
      %16 = vector.broadcast %cst_14 : f32 to vector<16x128xf32>
      %17 = arith.maximumf %15, %16 : vector<16x128xf32>
      %c0_15 = arith.constant 0 : index
      %c0_16 = arith.constant 0 : index
      %18 = vector.load %arg6[%c0_15, %c0_16] : memref<16x128xf32, #tpu.memory_space<vmem>>, vector<16x128xf32>
      tpu.vector_store %arg6[%c0_15, %c0_16], %17 {strides = array<i32>} : memref<16x128xf32, #tpu.memory_space<vmem>>, vector<16x128xf32>,
    } else {
    }
    return
  }
  func.func @transform_0(%arg0: i32, %arg1: i32, %arg2: i32) -> (i32, i32) {
    %c0_i32 = arith.constant 0 : i32
    return %arg1, %arg2 : i32, i32
  }
  func.func @transform_1(%arg0: i32, %arg1: i32, %arg2: i32) -> (i32, i32) {
    %c0_i32 = arith.constant 0 : i32
    return %arg2, %arg0 : i32, i32
  }
  func.func @transform_2(%arg0: i32, %arg1: i32, %arg2: i32) -> (i32, i32) {
    %c0_i32 = arith.constant 0 : i32
    %c0_i32_0 = arith.constant 0 : i32
    return %c0_i32, %arg0 : i32, i32
  }
  func.func @transform_3(%arg0: i32, %arg1: i32, %arg2: i32) -> (i32, i32) {
    %c0_i32 = arith.constant 0 : i32
    return %arg1, %arg0 : i32, i32
  }
}

</mosaic_0001>

<bundles_post_ra>
// kernel: tpu_custom_call.1
= control target key start
LH: loop header
LB: loop body
LE: loop exit
PB: predicated region body
PF: predicated region fallthrough
CT: control target
= control target key end

     0   :  { %8 = vsyncpa [#allocation4], 0  ;;  %s357_s0 = inlined_call_operand.hbm [shape: f32[16,32], index: 0, kind: input, shape index: {}]   ;;  %s358_s1 = inlined_call_operand.hbm [shape: f32[32,128], index: 1, kind: input, shape index: {}]   ;;  %s359_s2 = inlined_call_operand.vmem [shape: f32[1,128], index: 2, kind: input, shape index: {}]   ;;  %s360_s3 = inlined_call_operand.hbm [shape: f32[16,128], index: 3, kind: output, shape index: {}]  }
   0x1   :  { %9 = vsyncpa [#allocation7], 0 }
   0x2   :  { %10 = vsyncpa [#allocation5], 0  ;;  %s284_s12 = smov [#allocation3]   ;;  %s212_s16 = scalar_lea.hbm %s357_s0, 256 }
   0x3   :  { %s16_s13 = sshll.u32 %s284_s12, 4  ;;  %p213_p0 = scmp.ne.s32.totalorder %s357_s0, %s212_s16  ;;  %s17_s13 = int_to_ptr.vmem [resolvable:$true] %s16_s13 }
   0x4   :  { %p216_p1 = scmp.lt.u32.totalorder %s212_s16, %s357_s0 }
   0x6   :  { %p218_p2 = pnand %p216_p1, %p213_p0 }
   0x8   :  { %221 = shalt.err (!%p218_p2)
}
   0x9   :  { %s222_s21 = scalar_lea.vmem %s17_s13, 256  ;;  %p227_p4 = scmp.lt.s32.totalorder %s17_s13, %s17_s13 }
   0xa   :  { %p223_p3 = scmp.ne.s32.totalorder %s17_s13, %s222_s21  ;;  %p228_p5 = scmp.lt.s32.totalorder %s222_s21, %s222_s21 }
   0xc   :  { %p229_p6 = por %p228_p5, %p227_p4 }
   0xe   :  { %p230_p7 = pnand %p229_p6, %p223_p3 }
  0x10   :  { %233 = shalt.err (!%p230_p7)
}
  0x11   :  { %s285_s22 = smov 128   ;;  %s286_s23 = smov 8  }
  0x12   :  { %22 = dma.hbm_to_vmem [thread:$0]  %s357_s0, 256, %s17_s13, [#allocation4], %s285_s22, %s285_s22, %s286_s23  }
  0x13   :  { %s287_s26 = smov [#allocation6]   ;;  %s234_s30 = scalar_lea.hbm %s358_s1, 512 }
  0x14   :  { %s28_s27 = sshll.u32 %s287_s26, 4  ;;  %p235_p8 = scmp.ne.s32.totalorder %s358_s1, %s234_s30  ;;  %s29_s27 = int_to_ptr.vmem [resolvable:$true] %s28_s27 }
  0x15   :  { %p238_p9 = scmp.lt.u32.totalorder %s234_s30, %s358_s1 }
  0x17   :  { %p240_p10 = pnand %p238_p9, %p235_p8 }
  0x19   :  { %243 = shalt.err (!%p240_p10)
}
  0x1a   :  { %s244_s8 = scalar_lea.vmem %s29_s27, 512  ;;  %p249_p12 = scmp.lt.s32.totalorder %s29_s27, %s29_s27 }
  0x1b   :  { %p245_p11 = scmp.ne.s32.totalorder %s29_s27, %s244_s8  ;;  %p250_p13 = scmp.lt.s32.totalorder %s244_s8, %s244_s8 }
  0x1d   :  { %p251_p0 = por %p250_p13, %p249_p12 }
  0x1f   :  { %p252_p1 = pnand %p251_p0, %p245_p11 }
  0x21   :  { %255 = shalt.err (!%p252_p1)
}
  0x22   :  { %34 = dma.hbm_to_vmem [thread:$0]  %s358_s1, 512, %s29_s27, [#allocation7], %s285_s22, %s285_s22, %s286_s23  }
  0x23   :  { %278 = dma.done.wait [#allocation4], 256  }
  0x24   :  { %279 = vsyncadd [#allocation4], 4294967040 }
  0x25   :  { %280 = dma.done.wait [#allocation7], 512  }
  0x26   :  { %281 = vsyncadd [#allocation7], 4294966784  ;;  %vm57_vm0 = vcmask 261120   ;;  %v53_v0 = vld [vmem:[#allocation6] sm:$0xff]  ;;  %v54_v1 = vld [vmem:[#allocation6 + $0x8] sm:$0xff]  ;;  %s288_s11 = smov [#allocation8]  }
  0x27   :  { %v55_v2 = vld [vmem:[#allocation6 + $0x10] sm:$0xff]  ;;  %v199_v3 = vpack.c.bf16 %v54_v1, %v53_v0  ;;  %v56_v4 = vld [vmem:[#allocation6 + $0x18] sm:$0xff]  ;;  %s166_s12 = sshll.u32 %s288_s11, 4  ;;  %s167_s12 = int_to_ptr.vmem [resolvable:$true] %s166_s12 }
  0x28   :  { %v51_v5 = vld [vmem:[#allocation3] sm:$0xff]  ;;  %v203_v6 = vpack.c.bf16 %v56_v4, %v55_v2  ;;  %v52_v7 = vld [vmem:[#allocation3 + $0x8] sm:$0xff]  ;;  %s256_s13 = scalar_lea.vmem %s167_s12, 256  ;;  %p261_p3 = scmp.lt.s32.totalorder %s167_s12, %s167_s12 }
  0x29   :  { %196 = vmatprep.mubr.msk.f32.mxu0 %vm57_vm0, %v51_v5  ;;  %200 = vmatprep.subr.bf16.mxu0 %v199_v3  ;;  %v181_v8 = vld [vmem:[%s359_s2] ss:$0 sm:$0xff]  ;;  %p257_p2 = scmp.ne.s32.totalorder %s167_s12, %s256_s13  ;;  %p262_p4 = scmp.lt.s32.totalorder %s256_s13, %s256_s13 }
  0x2a   :  { %202 = vmatpush3.bf16.msra.mxu0 %v199_v3 }
  0x2b   :  { %204 = vmatprep.subr.bf16.mxu0 %v203_v6  ;;  %p263_p5 = por %p262_p4, %p261_p3 }
  0x2d   :  { %p264_p6 = pnand %p263_p5, %p257_p2 }
  0x2e   :  { %206 = vmatpush3.bf16.msra.mxu0 %v203_v6 }
  0x31   :  { %197 = vmatmul.mubr.msk.f32.vlgmr.msra.gmra.mrb[0].mxu0 %vm57_vm0, %v52_v7 }
 0x104   :  { %v198_v9 = vpop.f32.mrb[0].mxu0 }
 0x105   :  { %v156_v10 = vadd.f32 %v198_v9, %v181_v8  ;;  %v130_v11 = vpop.f32.mrb[1].mxu0 }
 0x106   :  { %v155_v12 = vadd.f32 %v181_v8, %v130_v11 }
 0x107   :  { %v158_v13 = vmax.f32 %v156_v10, 0.0 }
 0x108   :  { %v157_v14 = vmax.f32 %v155_v12, 0.0 }
 0x109   :  { %160 = vst [vmem:[#allocation8 + $0x8] sm:$0xff] %v158_v13 }
 0x10a   :  { %159 = vst [vmem:[#allocation8] sm:$0xff] %v157_v14 }
 0x10b   :  { %267 = shalt.err (!%p264_p6)
}
 0x10c   :  { %s268_s15 = scalar_lea.hbm %s360_s3, 256 }
 0x10d   :  { %p269_p7 = scmp.ne.s32.totalorder %s360_s3, %s268_s15  ;;  %p272_p8 = scmp.lt.u32.totalorder %s268_s15, %s360_s3 }
 0x10f   :  { %p274_p9 = pnand %p272_p8, %p269_p7 }
 0x111   :  { %277 = shalt.err (!%p274_p9)
}
 0x112   :  { %172 = dma.vmem_to_hbm [thread:$0]  %s167_s12, 256, %s360_s3, [#allocation5], %s285_s22, %s285_s22, %s286_s23  }
 0x113   :  { %282 = dma.done.wait [#allocation5], 256  }
 0x114   :  { %283 = vsyncadd [#allocation5], 4294967040 }
 0x115   :  { %176 = vsyncpa [#allocation4], 1 }
 0x116   :  { %177 = vsyncpa [#allocation7], 1 }
 0x117   :  { %178 = vsyncpa [#allocation5], 1 }

// kernel: tpu_custom_call.1
= control target key start
LH: loop header
LB: loop body
LE: loop exit
PB: predicated region body
PF: predicated region fallthrough
CT: control target
= control target key end

     0   :  { %8 = vsyncpa [#allocation4], 0  ;;  %s357_s0 = inlined_call_operand.hbm [shape: f32[16,32], index: 0, kind: input, shape index: {}]   ;;  %s358_s1 = inlined_call_operand.hbm [shape: f32[32,128], index: 1, kind: input, shape index: {}]   ;;  %s359_s2 = inlined_call_operand.vmem [shape: f32[1,128], index: 2, kind: input, shape index: {}]   ;;  %s360_s3 = inlined_call_operand.hbm [shape: f32[16,128], index: 3, kind: output, shape index: {}]  }
   0x1   :  { %9 = vsyncpa [#allocation7], 0 }
   0x2   :  { %10 = vsyncpa [#allocation5], 0  ;;  %s284_s12 = smov [#allocation3]   ;;  %s212_s16 = scalar_lea.hbm %s357_s0, 256 }
   0x3   :  { %s16_s13 = sshll.u32 %s284_s12, 4  ;;  %p213_p0 = scmp.ne.s32.totalorder %s357_s0, %s212_s16  ;;  %s17_s13 = int_to_ptr.vmem [resolvable:$true] %s16_s13 }
   0x4   :  { %p216_p1 = scmp.lt.u32.totalorder %s212_s16, %s357_s0 }
   0x6   :  { %p218_p2 = pnand %p216_p1, %p213_p0 }
   0x8   :  { %221 = shalt.err (!%p218_p2)
}
   0x9   :  { %s222_s21 = scalar_lea.vmem %s17_s13, 256  ;;  %p227_p4 = scmp.lt.s32.totalorder %s17_s13, %s17_s13 }
   0xa   :  { %p223_p3 = scmp.ne.s32.totalorder %s17_s13, %s222_s21  ;;  %p228_p5 = scmp.lt.s32.totalorder %s222_s21, %s222_s21 }
   0xc   :  { %p229_p6 = por %p228_p5, %p227_p4 }
   0xe   :  { %p230_p7 = pnand %p229_p6, %p223_p3 }
  0x10   :  { %233 = shalt.err (!%p230_p7)
}
  0x11   :  { %s285_s22 = smov 128   ;;  %s286_s23 = smov 8  }
  0x12   :  { %22 = dma.hbm_to_vmem [thread:$0]  %s357_s0, 256, %s17_s13, [#allocation4], %s285_s22, %s285_s22, %s286_s23  }
  0x13   :  { %s287_s26 = smov [#allocation6]   ;;  %s234_s30 = scalar_lea.hbm %s358_s1, 512 }
  0x14   :  { %s28_s27 = sshll.u32 %s287_s26, 4  ;;  %p235_p8 = scmp.ne.s32.totalorder %s358_s1, %s234_s30  ;;  %s29_s27 = int_to_ptr.vmem [resolvable:$true] %s28_s27 }
  0x15   :  { %p238_p9 = scmp.lt.u32.totalorder %s234_s30, %s358_s1 }
  0x17   :  { %p240_p10 = pnand %p238_p9, %p235_p8 }
  0x19   :  { %243 = shalt.err (!%p240_p10)
}
  0x1a   :  { %s244_s8 = scalar_lea.vmem %s29_s27, 512  ;;  %p249_p12 = scmp.lt.s32.totalorder %s29_s27, %s29_s27 }
  0x1b   :  { %p245_p11 = scmp.ne.s32.totalorder %s29_s27, %s244_s8  ;;  %p250_p13 = scmp.lt.s32.totalorder %s244_s8, %s244_s8 }
  0x1d   :  { %p251_p0 = por %p250_p13, %p249_p12 }
  0x1f   :  { %p252_p1 = pnand %p251_p0, %p245_p11 }
  0x21   :  { %255 = shalt.err (!%p252_p1)
}
  0x22   :  { %34 = dma.hbm_to_vmem [thread:$0]  %s358_s1, 512, %s29_s27, [#allocation7], %s285_s22, %s285_s22, %s286_s23  }
  0x23   :  { %278 = dma.done.wait [#allocation4], 256  }
  0x24   :  { %279 = vsyncadd [#allocation4], 4294967040 }
  0x25   :  { %280 = dma.done.wait [#allocation7], 512  }
  0x26   :  { %281 = vsyncadd [#allocation7], 4294966784  ;;  %vm57_vm0 = vcmask 261120   ;;  %v53_v0 = vld [vmem:[#allocation6] sm:$0xff]  ;;  %v54_v1 = vld [vmem:[#allocation6 + $0x8] sm:$0xff]  ;;  %s288_s11 = smov [#allocation8]  }
  0x27   :  { %v55_v2 = vld [vmem:[#allocation6 + $0x10] sm:$0xff]  ;;  %v199_v3 = vpack.c.bf16 %v54_v1, %v53_v0  ;;  %v56_v4 = vld [vmem:[#allocation6 + $0x18] sm:$0xff]  ;;  %s166_s12 = sshll.u32 %s288_s11, 4  ;;  %s167_s12 = int_to_ptr.vmem [resolvable:$true] %s166_s12 }
  0x28   :  { %v51_v5 = vld [vmem:[#allocation3] sm:$0xff]  ;;  %v203_v6 = vpack.c.bf16 %v56_v4, %v55_v2  ;;  %v52_v7 = vld [vmem:[#allocation3 + $0x8] sm:$0xff]  ;;  %s256_s13 = scalar_lea.vmem %s167_s12, 256  ;;  %p261_p3 = scmp.lt.s32.totalorder %s167_s12, %s167_s12 }
  0x29   :  { %196 = vmatprep.mubr.msk.f32.mxu0 %vm57_vm0, %v51_v5  ;;  %200 = vmatprep.subr.bf16.mxu0 %v199_v3  ;;  %v181_v8 = vld [vmem:[%s359_s2] ss:$0 sm:$0xff]  ;;  %p257_p2 = scmp.ne.s32.totalorder %s167_s12, %s256_s13  ;;  %p262_p4 = scmp.lt.s32.totalorder %s256_s13, %s256_s13 }
  0x2a   :  { %202 = vmatpush3.bf16.msra.mxu0 %v199_v3 }
  0x2b   :  { %204 = vmatprep.subr.bf16.mxu0 %v203_v6  ;;  %p263_p5 = por %p262_p4, %p261_p3 }
  0x2d   :  { %p264_p6 = pnand %p263_p5, %p257_p2 }
  0x2e   :  { %206 = vmatpush3.bf16.msra.mxu0 %v203_v6 }
  0x31   :  { %197 = vmatmul.mubr.msk.f32.vlgmr.msra.gmra.mrb[0].mxu0 %vm57_vm0, %v52_v7 }
 0x104   :  { %v198_v9 = vpop.f32.mrb[0].mxu0 }
 0x105   :  { %v156_v10 = vadd.f32 %v198_v9, %v181_v8  ;;  %v130_v11 = vpop.f32.mrb[1].mxu0 }
 0x106   :  { %v155_v12 = vadd.f32 %v181_v8, %v130_v11 }
 0x107   :  { %v158_v13 = vmax.f32 %v156_v10, 0.0 }
 0x108   :  { %v157_v14 = vmax.f32 %v155_v12, 0.0 }
 0x109   :  { %160 = vst [vmem:[#allocation8 + $0x8] sm:$0xff] %v158_v13 }
 0x10a   :  { %159 = vst [vmem:[#allocation8] sm:$0xff] %v157_v14 }
 0x10b   :  { %267 = shalt.err (!%p264_p6)
}
 0x10c   :  { %s268_s15 = scalar_lea.hbm %s360_s3, 256 }
 0x10d   :  { %p269_p7 = scmp.ne.s32.totalorder %s360_s3, %s268_s15  ;;  %p272_p8 = scmp.lt.u32.totalorder %s268_s15, %s360_s3 }
 0x10f   :  { %p274_p9 = pnand %p272_p8, %p269_p7 }
 0x111   :  { %277 = shalt.err (!%p274_p9)
}
 0x112   :  { %172 = dma.vmem_to_hbm [thread:$0]  %s167_s12, 256, %s360_s3, [#allocation5], %s285_s22, %s285_s22, %s286_s23  }
 0x113   :  { %282 = dma.done.wait [#allocation5], 256  }
 0x114   :  { %283 = vsyncadd [#allocation5], 4294967040 }
 0x115   :  { %176 = vsyncpa [#allocation4], 1 }
 0x116   :  { %177 = vsyncpa [#allocation7], 1 }
 0x117   :  { %178 = vsyncpa [#allocation5], 1 }

</bundles_post_ra>
